<compile_context>
chip_gen: v6e
topology: v6e:2x2x1
jax: 0.10.0
libtpu: 0.0.40
codegen_flags: <defaults>
</compile_context>

<pallas_src>
import jax
import jax.numpy as jnp
from jax import lax
from jax.experimental import pallas as pl
from jax.experimental.pallas import tpu as pltpu


def lstm_tagger_kernel(ids_ref, emb_ref, w_ih_ref, w_hh_ref, bias_ref,
                       w_tag_ref, b_tag_ref, out_ref, xproj_ref, hist_ref):
    T = ids_ref.shape[0]
    V = emb_ref.shape[0]
    H = w_hh_ref.shape[0]          # w_hh is pre-transposed: (H, 4H)

    # --- embedding lookup + input projection fused as one-hot matmuls ---
    # emb_proj[v] = emb[v] @ w_ih + (b_ih + b_hh)            -> (V, 4H)
    # xproj[t]    = emb_proj[ids[t]]                          -> (T, 4H)
    ids = ids_ref[...]                                        # (T, 1) int32
    onehot = (lax.broadcasted_iota(jnp.int32, (T, V), 1) == ids
              ).astype(jnp.float32)                           # (T, V)
    emb_proj = jnp.dot(emb_ref[...], w_ih_ref[...],
                       preferred_element_type=jnp.float32) + bias_ref[...]
    xproj_ref[...] = jnp.dot(onehot, emb_proj,
                             preferred_element_type=jnp.float32)

    w_hh = w_hh_ref[...]                                      # (H, 4H), no .T

    # --- LSTM recurrence (PyTorch gate order: i, f, g, o) ---
    def step(t, carry):
        h, c = carry                                          # (1, H) each
        gates = xproj_ref[pl.ds(t, 1), :] + jnp.dot(
            h, w_hh, preferred_element_type=jnp.float32)      # (1, 4H)
        # Two full-width EUP ops instead of four masked 32-lane slices.
        sig = jax.nn.sigmoid(gates)
        tnh = jnp.tanh(gates)
        i = sig[:, 0 * H:1 * H]
        f = sig[:, 1 * H:2 * H]
        g = tnh[:, 2 * H:3 * H]
        o = sig[:, 3 * H:4 * H]
        c_new = f * c + i * g
        h_new = o * jnp.tanh(c_new)
        hist_ref[pl.ds(t, 1), :] = h_new
        return h_new, c_new

    h0 = jnp.zeros((1, H), jnp.float32)
    c0 = jnp.zeros((1, H), jnp.float32)
    lax.fori_loop(0, T, step, (h0, c0), unroll=True)          # T static, small

    # --- hidden2tag + log_softmax over the tag dimension ---
    tag_space = jnp.dot(hist_ref[...], w_tag_ref[...],
                        preferred_element_type=jnp.float32) + b_tag_ref[...]
    m = jnp.max(tag_space, axis=-1, keepdims=True)
    lse = m + jnp.log(jnp.sum(jnp.exp(tag_space - m), axis=-1, keepdims=True))
    out_ref[...] = tag_space - lse


def lstm_tagger(sentence, emb, w_ih, w_hh, b_ih, b_hh, w_tag, b_tag):
    T = sentence.shape[0]
    H = w_hh.shape[1]
    TAGS = w_tag.shape[0]
    vmem = pl.BlockSpec(memory_space=pltpu.MemorySpace.VMEM)
    return pl.pallas_call(
        lstm_tagger_kernel,
        out_shape=jax.ShapeDtypeStruct((T, TAGS), jnp.float32),
        in_specs=[vmem] * 7,
        out_specs=vmem,
        scratch_shapes=[
            pltpu.VMEM((T, 4 * H), jnp.float32),   # precomputed x projections
            pltpu.VMEM((T, H), jnp.float32),       # lstm_out history
        ],
    )(sentence.astype(jnp.int32).reshape(T, 1),
      emb,
      w_ih.T,                          # (E, 4H) — transposed on host
      w_hh.T,                          # (H, 4H)
      (b_ih + b_hh).reshape(1, -1),    # combined bias (1, 4H)
      w_tag.T,                         # (H, TAGS)
      b_tag.reshape(1, -1))


def reference(sentence, emb, w_ih, w_hh, b_ih, b_hh, w_tag, b_tag):
    """Pure-JAX reference mirroring the PyTorch forward."""
    x = emb[sentence]                                     # (T, E)
    H = w_hh.shape[1]

    def step(carry, x_t):
        h, c = carry
        gates = x_t @ w_ih.T + b_ih + h @ w_hh.T + b_hh
        i = jax.nn.sigmoid(gates[0 * H:1 * H])
        f = jax.nn.sigmoid(gates[1 * H:2 * H])
        g = jnp.tanh(gates[2 * H:3 * H])
        o = jax.nn.sigmoid(gates[3 * H:4 * H])
        c_new = f * c + i * g
        h_new = o * jnp.tanh(c_new)
        return (h_new, c_new), h_new

    (_, _), hs = lax.scan(step, (jnp.zeros(H), jnp.zeros(H)), x)
    tag_space = hs @ w_tag.T + b_tag
    return jax.nn.log_softmax(tag_space, axis=1)


if __name__ == "__main__":
    EMBEDDING_DIM = 32
    HIDDEN_DIM = 32
    VOCAB_SIZE = 16
    TAGSET_SIZE = 8
    SEQ_LEN = 8

    key = jax.random.PRNGKey(0)
    k = jax.random.split(key, 9)
    bound_lstm = 1.0 / jnp.sqrt(HIDDEN_DIM)
    bound_lin = 1.0 / jnp.sqrt(HIDDEN_DIM)

    sentence = jax.random.randint(k[0], (SEQ_LEN,), 0, VOCAB_SIZE, dtype=jnp.int32)
    emb = jax.random.normal(k[1], (VOCAB_SIZE, EMBEDDING_DIM), jnp.float32)
    w_ih = jax.random.uniform(k[2], (4 * HIDDEN_DIM, EMBEDDING_DIM),
                              jnp.float32, -bound_lstm, bound_lstm)
    w_hh = jax.random.uniform(k[3], (4 * HIDDEN_DIM, HIDDEN_DIM),
                              jnp.float32, -bound_lstm, bound_lstm)
    b_ih = jax.random.uniform(k[4], (4 * HIDDEN_DIM,), jnp.float32,
                              -bound_lstm, bound_lstm)
    b_hh = jax.random.uniform(k[5], (4 * HIDDEN_DIM,), jnp.float32,
                              -bound_lstm, bound_lstm)
    w_tag = jax.random.uniform(k[6], (TAGSET_SIZE, HIDDEN_DIM), jnp.float32,
                               -bound_lin, bound_lin)
    b_tag = jax.random.uniform(k[7], (TAGSET_SIZE,), jnp.float32,
                               -bound_lin, bound_lin)

    out = lstm_tagger(sentence, emb, w_ih, w_hh, b_ih, b_hh, w_tag, b_tag)
    out = jax.block_until_ready(out)

    ref = reference(sentence, emb, w_ih, w_hh, b_ih, b_hh, w_tag, b_tag)
    assert out.shape == (SEQ_LEN, TAGSET_SIZE)
    assert jnp.allclose(out, ref, atol=1e-3, rtol=1e-3)

    print("KERNEL_OK")
</pallas_src>

<mosaic_0001>
module attributes {stable_mosaic.version = 11 : i64} {
  func.func @lstm_tagger_kernel(%arg0: memref<8x1xi32, #tpu.memory_space<vmem>>, %arg1: memref<16x32xf32, #tpu.memory_space<vmem>>, %arg2: memref<32x128xf32, #tpu.memory_space<vmem>>, %arg3: memref<32x128xf32, #tpu.memory_space<vmem>>, %arg4: memref<1x128xf32, #tpu.memory_space<vmem>>, %arg5: memref<32x8xf32, #tpu.memory_space<vmem>>, %arg6: memref<1x8xf32, #tpu.memory_space<vmem>>, %arg7: memref<8x8xf32, #tpu.memory_space<vmem>>, %arg8: memref<8x128xf32, #tpu.memory_space<vmem>>, %arg9: memref<8x32xf32, #tpu.memory_space<vmem>>) attributes {dimension_semantics = [], scalar_prefetch = 0 : i64, scratch_operands = 2 : i64, tpu.core_type = #tpu.core_type<tc>} {
    %c0 = arith.constant 0 : index
    %c0_0 = arith.constant 0 : index
    %0 = vector.load %arg0[%c0, %c0_0] : memref<8x1xi32, #tpu.memory_space<vmem>>, vector<8x1xi32>
    %1 = tpu.iota {dimensions = array<i32: 1>} : vector<8x16xi32>
    %2 = vector.broadcast %0 : vector<8x1xi32> to vector<8x16xi32>
    %3 = arith.cmpi eq, %1, %2 : vector<8x16xi32>
    %4 = arith.extui %3 : vector<8x16xi1> to vector<8x16xi32>
    %5 = arith.sitofp %4 : vector<8x16xi32> to vector<8x16xf32>
    %c0_1 = arith.constant 0 : index
    %c0_2 = arith.constant 0 : index
    %6 = vector.load %arg1[%c0_1, %c0_2] : memref<16x32xf32, #tpu.memory_space<vmem>>, vector<16x32xf32>
    %c0_3 = arith.constant 0 : index
    %c0_4 = arith.constant 0 : index
    %7 = vector.load %arg2[%c0_3, %c0_4] : memref<32x128xf32, #tpu.memory_space<vmem>>, vector<32x128xf32>
    %cst = arith.constant dense<0.000000e+00> : vector<16x128xf32>
    %8 = tpu.matmul %6, %7, %cst {dimension_numbers = #tpu.dot_dimension_numbers<[1], [0], [0], [1], [0, 0, 1, 1], [], []>} : vector<16x32xf32>, vector<32x128xf32>, vector<16x128xf32> -> vector<16x128xf32>
    %c0_5 = arith.constant 0 : index
    %c0_6 = arith.constant 0 : index
    %9 = vector.load %arg4[%c0_5, %c0_6] : memref<1x128xf32, #tpu.memory_space<vmem>>, vector<1x128xf32>
    %10 = vector.broadcast %9 : vector<1x128xf32> to vector<16x128xf32>
    %11 = arith.addf %8, %10 : vector<16x128xf32>
    %cst_7 = arith.constant dense<0.000000e+00> : vector<8x128xf32>
    %12 = tpu.matmul %5, %11, %cst_7 {dimension_numbers = #tpu.dot_dimension_numbers<[1], [0], [0], [1], [0, 0, 1, 1], [], []>} : vector<8x16xf32>, vector<16x128xf32>, vector<8x128xf32> -> vector<8x128xf32>
    %c0_8 = arith.constant 0 : index
    %c0_9 = arith.constant 0 : index
    %13 = vector.load %arg8[%c0_8, %c0_9] : memref<8x128xf32, #tpu.memory_space<vmem>>, vector<8x128xf32>
    tpu.vector_store %arg8[%c0_8, %c0_9], %12 {strides = array<i32>} : memref<8x128xf32, #tpu.memory_space<vmem>>, vector<8x128xf32>,
    %c0_10 = arith.constant 0 : index
    %c0_11 = arith.constant 0 : index
    %14 = vector.load %arg3[%c0_10, %c0_11] : memref<32x128xf32, #tpu.memory_space<vmem>>, vector<32x128xf32>
    %cst_12 = arith.constant 0.000000e+00 : f32
    %15 = vector.broadcast %cst_12 : f32 to vector<1x32xf32>
    %cst_13 = arith.constant 0.000000e+00 : f32
    %16 = vector.broadcast %cst_13 : f32 to vector<1x32xf32>
    %c0_i32 = arith.constant 0 : i32
    %17 = arith.index_cast %c0_i32 : i32 to index
    %c0_14 = arith.constant 0 : index
    %18 = vector.load %arg8[%17, %c0_14] : memref<8x128xf32, #tpu.memory_space<vmem>>, vector<1x128xf32>
    %cst_15 = arith.constant dense<0.000000e+00> : vector<1x128xf32>
    %19 = tpu.matmul %15, %14, %cst_15 {dimension_numbers = #tpu.dot_dimension_numbers<[1], [0], [0], [1], [0, 0, 1, 1], [], []>} : vector<1x32xf32>, vector<32x128xf32>, vector<1x128xf32> -> vector<1x128xf32>
    %20 = arith.addf %18, %19 : vector<1x128xf32>
    %21 = arith.negf %20 : vector<1x128xf32>
    %22 = math.exp %21 : vector<1x128xf32>
    %cst_16 = arith.constant 1.000000e+00 : f32
    %23 = vector.broadcast %cst_16 : f32 to vector<1x128xf32>
    %24 = arith.addf %23, %22 : vector<1x128xf32>
    %25 = arith.divf %23, %24 : vector<1x128xf32>
    %26 = math.tanh %20 : vector<1x128xf32>
    %27 = vector.extract_strided_slice %25 {offsets = [0, 0], sizes = [1, 32], strides = [1, 1]} : vector<1x128xf32> to vector<1x32xf32>
    %28 = vector.extract_strided_slice %25 {offsets = [0, 32], sizes = [1, 32], strides = [1, 1]} : vector<1x128xf32> to vector<1x32xf32>
    %29 = vector.extract_strided_slice %26 {offsets = [0, 64], sizes = [1, 32], strides = [1, 1]} : vector<1x128xf32> to vector<1x32xf32>
    %30 = vector.extract_strided_slice %25 {offsets = [0, 96], sizes = [1, 32], strides = [1, 1]} : vector<1x128xf32> to vector<1x32xf32>
    %31 = arith.mulf %28, %16 : vector<1x32xf32>
    %32 = arith.mulf %27, %29 : vector<1x32xf32>
    %33 = arith.addf %31, %32 : vector<1x32xf32>
    %34 = math.tanh %33 : vector<1x32xf32>
    %35 = arith.mulf %30, %34 : vector<1x32xf32>
    %36 = arith.index_cast %c0_i32 : i32 to index
    %c0_17 = arith.constant 0 : index
    %37 = vector.load %arg9[%36, %c0_17] : memref<8x32xf32, #tpu.memory_space<vmem>>, vector<1x32xf32>
    tpu.vector_store %arg9[%36, %c0_17], %35 {strides = array<i32>} : memref<8x32xf32, #tpu.memory_space<vmem>>, vector<1x32xf32>,
    %c1_i32 = arith.constant 1 : i32
    %38 = arith.index_cast %c1_i32 : i32 to index
    %c0_18 = arith.constant 0 : index
    %39 = vector.load %arg8[%38, %c0_18] : memref<8x128xf32, #tpu.memory_space<vmem>>, vector<1x128xf32>
    %cst_19 = arith.constant dense<0.000000e+00> : vector<1x128xf32>
    %40 = tpu.matmul %35, %14, %cst_19 {dimension_numbers = #tpu.dot_dimension_numbers<[1], [0], [0], [1], [0, 0, 1, 1], [], []>} : vector<1x32xf32>, vector<32x128xf32>, vector<1x128xf32> -> vector<1x128xf32>
    %41 = arith.addf %39, %40 : vector<1x128xf32>
    %42 = arith.negf %41 : vector<1x128xf32>
    %43 = math.exp %42 : vector<1x128xf32>
    %cst_20 = arith.constant 1.000000e+00 : f32
    %44 = vector.broadcast %cst_20 : f32 to vector<1x128xf32>
    %45 = arith.addf %44, %43 : vector<1x128xf32>
    %46 = arith.divf %44, %45 : vector<1x128xf32>
    %47 = math.tanh %41 : vector<1x128xf32>
    %48 = vector.extract_strided_slice %46 {offsets = [0, 0], sizes = [1, 32], strides = [1, 1]} : vector<1x128xf32> to vector<1x32xf32>
    %49 = vector.extract_strided_slice %46 {offsets = [0, 32], sizes = [1, 32], strides = [1, 1]} : vector<1x128xf32> to vector<1x32xf32>
    %50 = vector.extract_strided_slice %47 {offsets = [0, 64], sizes = [1, 32], strides = [1, 1]} : vector<1x128xf32> to vector<1x32xf32>
    %51 = vector.extract_strided_slice %46 {offsets = [0, 96], sizes = [1, 32], strides = [1, 1]} : vector<1x128xf32> to vector<1x32xf32>
    %52 = arith.mulf %49, %33 : vector<1x32xf32>
    %53 = arith.mulf %48, %50 : vector<1x32xf32>
    %54 = arith.addf %52, %53 : vector<1x32xf32>
    %55 = math.tanh %54 : vector<1x32xf32>
    %56 = arith.mulf %51, %55 : vector<1x32xf32>
    %57 = arith.index_cast %c1_i32 : i32 to index
    %c0_21 = arith.constant 0 : index
    %58 = vector.load %arg9[%57, %c0_21] : memref<8x32xf32, #tpu.memory_space<vmem>>, vector<1x32xf32>
    tpu.vector_store %arg9[%57, %c0_21], %56 {strides = array<i32>} : memref<8x32xf32, #tpu.memory_space<vmem>>, vector<1x32xf32>,
    %c2_i32 = arith.constant 2 : i32
    %59 = arith.index_cast %c2_i32 : i32 to index
    %c0_22 = arith.constant 0 : index
    %60 = vector.load %arg8[%59, %c0_22] : memref<8x128xf32, #tpu.memory_space<vmem>>, vector<1x128xf32>
    %cst_23 = arith.constant dense<0.000000e+00> : vector<1x128xf32>
    %61 = tpu.matmul %56, %14, %cst_23 {dimension_numbers = #tpu.dot_dimension_numbers<[1], [0], [0], [1], [0, 0, 1, 1], [], []>} : vector<1x32xf32>, vector<32x128xf32>, vector<1x128xf32> -> vector<1x128xf32>
    %62 = arith.addf %60, %61 : vector<1x128xf32>
    %63 = arith.negf %62 : vector<1x128xf32>
    %64 = math.exp %63 : vector<1x128xf32>
    %cst_24 = arith.constant 1.000000e+00 : f32
    %65 = vector.broadcast %cst_24 : f32 to vector<1x128xf32>
    %66 = arith.addf %65, %64 : vector<1x128xf32>
    %67 = arith.divf %65, %66 : vector<1x128xf32>
    %68 = math.tanh %62 : vector<1x128xf32>
    %69 = vector.extract_strided_slice %67 {offsets = [0, 0], sizes = [1, 32], strides = [1, 1]} : vector<1x128xf32> to vector<1x32xf32>
    %70 = vector.extract_strided_slice %67 {offsets = [0, 32], sizes = [1, 32], strides = [1, 1]} : vector<1x128xf32> to vector<1x32xf32>
    %71 = vector.extract_strided_slice %68 {offsets = [0, 64], sizes = [1, 32], strides = [1, 1]} : vector<1x128xf32> to vector<1x32xf32>
    %72 = vector.extract_strided_slice %67 {offsets = [0, 96], sizes = [1, 32], strides = [1, 1]} : vector<1x128xf32> to vector<1x32xf32>
    %73 = arith.mulf %70, %54 : vector<1x32xf32>
    %74 = arith.mulf %69, %71 : vector<1x32xf32>
    %75 = arith.addf %73, %74 : vector<1x32xf32>
    %76 = math.tanh %75 : vector<1x32xf32>
    %77 = arith.mulf %72, %76 : vector<1x32xf32>
    %78 = arith.index_cast %c2_i32 : i32 to index
    %c0_25 = arith.constant 0 : index
    %79 = vector.load %arg9[%78, %c0_25] : memref<8x32xf32, #tpu.memory_space<vmem>>, vector<1x32xf32>
    tpu.vector_store %arg9[%78, %c0_25], %77 {strides = array<i32>} : memref<8x32xf32, #tpu.memory_space<vmem>>, vector<1x32xf32>,
    %c3_i32 = arith.constant 3 : i32
    %80 = arith.index_cast %c3_i32 : i32 to index
    %c0_26 = arith.constant 0 : index
    %81 = vector.load %arg8[%80, %c0_26] : memref<8x128xf32, #tpu.memory_space<vmem>>, vector<1x128xf32>
    %cst_27 = arith.constant dense<0.000000e+00> : vector<1x128xf32>
    %82 = tpu.matmul %77, %14, %cst_27 {dimension_numbers = #tpu.dot_dimension_numbers<[1], [0], [0], [1], [0, 0, 1, 1], [], []>} : vector<1x32xf32>, vector<32x128xf32>, vector<1x128xf32> -> vector<1x128xf32>
    %83 = arith.addf %81, %82 : vector<1x128xf32>
    %84 = arith.negf %83 : vector<1x128xf32>
    %85 = math.exp %84 : vector<1x128xf32>
    %cst_28 = arith.constant 1.000000e+00 : f32
    %86 = vector.broadcast %cst_28 : f32 to vector<1x128xf32>
    %87 = arith.addf %86, %85 : vector<1x128xf32>
    %88 = arith.divf %86, %87 : vector<1x128xf32>
    %89 = math.tanh %83 : vector<1x128xf32>
    %90 = vector.extract_strided_slice %88 {offsets = [0, 0], sizes = [1, 32], strides = [1, 1]} : vector<1x128xf32> to vector<1x32xf32>
    %91 = vector.extract_strided_slice %88 {offsets = [0, 32], sizes = [1, 32], strides = [1, 1]} : vector<1x128xf32> to vector<1x32xf32>
    %92 = vector.extract_strided_slice %89 {offsets = [0, 64], sizes = [1, 32], strides = [1, 1]} : vector<1x128xf32> to vector<1x32xf32>
    %93 = vector.extract_strided_slice %88 {offsets = [0, 96], sizes = [1, 32], strides = [1, 1]} : vector<1x128xf32> to vector<1x32xf32>
    %94 = arith.mulf %91, %75 : vector<1x32xf32>
    %95 = arith.mulf %90, %92 : vector<1x32xf32>
    %96 = arith.addf %94, %95 : vector<1x32xf32>
    %97 = math.tanh %96 : vector<1x32xf32>
    %98 = arith.mulf %93, %97 : vector<1x32xf32>
    %99 = arith.index_cast %c3_i32 : i32 to index
    %c0_29 = arith.constant 0 : index
    %100 = vector.load %arg9[%99, %c0_29] : memref<8x32xf32, #tpu.memory_space<vmem>>, vector<1x32xf32>
    tpu.vector_store %arg9[%99, %c0_29], %98 {strides = array<i32>} : memref<8x32xf32, #tpu.memory_space<vmem>>, vector<1x32xf32>,
    %c4_i32 = arith.constant 4 : i32
    %101 = arith.index_cast %c4_i32 : i32 to index
    %c0_30 = arith.constant 0 : index
    %102 = vector.load %arg8[%101, %c0_30] : memref<8x128xf32, #tpu.memory_space<vmem>>, vector<1x128xf32>
    %cst_31 = arith.constant dense<0.000000e+00> : vector<1x128xf32>
    %103 = tpu.matmul %98, %14, %cst_31 {dimension_numbers = #tpu.dot_dimension_numbers<[1], [0], [0], [1], [0, 0, 1, 1], [], []>} : vector<1x32xf32>, vector<32x128xf32>, vector<1x128xf32> -> vector<1x128xf32>
    %104 = arith.addf %102, %103 : vector<1x128xf32>
    %105 = arith.negf %104 : vector<1x128xf32>
    %106 = math.exp %105 : vector<1x128xf32>
    %cst_32 = arith.constant 1.000000e+00 : f32
    %107 = vector.broadcast %cst_32 : f32 to vector<1x128xf32>
    %108 = arith.addf %107, %106 : vector<1x128xf32>
    %109 = arith.divf %107, %108 : vector<1x128xf32>
    %110 = math.tanh %104 : vector<1x128xf32>
    %111 = vector.extract_strided_slice %109 {offsets = [0, 0], sizes = [1, 32], strides = [1, 1]} : vector<1x128xf32> to vector<1x32xf32>
    %112 = vector.extract_strided_slice %109 {offsets = [0, 32], sizes = [1, 32], strides = [1, 1]} : vector<1x128xf32> to vector<1x32xf32>
    %113 = vector.extract_strided_slice %110 {offsets = [0, 64], sizes = [1, 32], strides = [1, 1]} : vector<1x128xf32> to vector<1x32xf32>
    %114 = vector.extract_strided_slice %109 {offsets = [0, 96], sizes = [1, 32], strides = [1, 1]} : vector<1x128xf32> to vector<1x32xf32>
    %115 = arith.mulf %112, %96 : vector<1x32xf32>
    %116 = arith.mulf %111, %113 : vector<1x32xf32>
    %117 = arith.addf %115, %116 : vector<1x32xf32>
    %118 = math.tanh %117 : vector<1x32xf32>
    %119 = arith.mulf %114, %118 : vector<1x32xf32>
    %120 = arith.index_cast %c4_i32 : i32 to index
    %c0_33 = arith.constant 0 : index
    %121 = vector.load %arg9[%120, %c0_33] : memref<8x32xf32, #tpu.memory_space<vmem>>, vector<1x32xf32>
    tpu.vector_store %arg9[%120, %c0_33], %119 {strides = array<i32>} : memref<8x32xf32, #tpu.memory_space<vmem>>, vector<1x32xf32>,
    %c5_i32 = arith.constant 5 : i32
    %122 = arith.index_cast %c5_i32 : i32 to index
    %c0_34 = arith.constant 0 : index
    %123 = vector.load %arg8[%122, %c0_34] : memref<8x128xf32, #tpu.memory_space<vmem>>, vector<1x128xf32>
    %cst_35 = arith.constant dense<0.000000e+00> : vector<1x128xf32>
    %124 = tpu.matmul %119, %14, %cst_35 {dimension_numbers = #tpu.dot_dimension_numbers<[1], [0], [0], [1], [0, 0, 1, 1], [], []>} : vector<1x32xf32>, vector<32x128xf32>, vector<1x128xf32> -> vector<1x128xf32>
    %125 = arith.addf %123, %124 : vector<1x128xf32>
    %126 = arith.negf %125 : vector<1x128xf32>
    %127 = math.exp %126 : vector<1x128xf32>
    %cst_36 = arith.constant 1.000000e+00 : f32
    %128 = vector.broadcast %cst_36 : f32 to vector<1x128xf32>
    %129 = arith.addf %128, %127 : vector<1x128xf32>
    %130 = arith.divf %128, %129 : vector<1x128xf32>
    %131 = math.tanh %125 : vector<1x128xf32>
    %132 = vector.extract_strided_slice %130 {offsets = [0, 0], sizes = [1, 32], strides = [1, 1]} : vector<1x128xf32> to vector<1x32xf32>
    %133 = vector.extract_strided_slice %130 {offsets = [0, 32], sizes = [1, 32], strides = [1, 1]} : vector<1x128xf32> to vector<1x32xf32>
    %134 = vector.extract_strided_slice %131 {offsets = [0, 64], sizes = [1, 32], strides = [1, 1]} : vector<1x128xf32> to vector<1x32xf32>
    %135 = vector.extract_strided_slice %130 {offsets = [0, 96], sizes = [1, 32], strides = [1, 1]} : vector<1x128xf32> to vector<1x32xf32>
    %136 = arith.mulf %133, %117 : vector<1x32xf32>
    %137 = arith.mulf %132, %134 : vector<1x32xf32>
    %138 = arith.addf %136, %137 : vector<1x32xf32>
    %139 = math.tanh %138 : vector<1x32xf32>
    %140 = arith.mulf %135, %139 : vector<1x32xf32>
    %141 = arith.index_cast %c5_i32 : i32 to index
    %c0_37 = arith.constant 0 : index
    %142 = vector.load %arg9[%141, %c0_37] : memref<8x32xf32, #tpu.memory_space<vmem>>, vector<1x32xf32>
    tpu.vector_store %arg9[%141, %c0_37], %140 {strides = array<i32>} : memref<8x32xf32, #tpu.memory_space<vmem>>, vector<1x32xf32>,
    %c6_i32 = arith.constant 6 : i32
    %143 = arith.index_cast %c6_i32 : i32 to index
    %c0_38 = arith.constant 0 : index
    %144 = vector.load %arg8[%143, %c0_38] : memref<8x128xf32, #tpu.memory_space<vmem>>, vector<1x128xf32>
    %cst_39 = arith.constant dense<0.000000e+00> : vector<1x128xf32>
    %145 = tpu.matmul %140, %14, %cst_39 {dimension_numbers = #tpu.dot_dimension_numbers<[1], [0], [0], [1], [0, 0, 1, 1], [], []>} : vector<1x32xf32>, vector<32x128xf32>, vector<1x128xf32> -> vector<1x128xf32>
    %146 = arith.addf %144, %145 : vector<1x128xf32>
    %147 = arith.negf %146 : vector<1x128xf32>
    %148 = math.exp %147 : vector<1x128xf32>
    %cst_40 = arith.constant 1.000000e+00 : f32
    %149 = vector.broadcast %cst_40 : f32 to vector<1x128xf32>
    %150 = arith.addf %149, %148 : vector<1x128xf32>
    %151 = arith.divf %149, %150 : vector<1x128xf32>
    %152 = math.tanh %146 : vector<1x128xf32>
    %153 = vector.extract_strided_slice %151 {offsets = [0, 0], sizes = [1, 32], strides = [1, 1]} : vector<1x128xf32> to vector<1x32xf32>
    %154 = vector.extract_strided_slice %151 {offsets = [0, 32], sizes = [1, 32], strides = [1, 1]} : vector<1x128xf32> to vector<1x32xf32>
    %155 = vector.extract_strided_slice %152 {offsets = [0, 64], sizes = [1, 32], strides = [1, 1]} : vector<1x128xf32> to vector<1x32xf32>
    %156 = vector.extract_strided_slice %151 {offsets = [0, 96], sizes = [1, 32], strides = [1, 1]} : vector<1x128xf32> to vector<1x32xf32>
    %157 = arith.mulf %154, %138 : vector<1x32xf32>
    %158 = arith.mulf %153, %155 : vector<1x32xf32>
    %159 = arith.addf %157, %158 : vector<1x32xf32>
    %160 = math.tanh %159 : vector<1x32xf32>
    %161 = arith.mulf %156, %160 : vector<1x32xf32>
    %162 = arith.index_cast %c6_i32 : i32 to index
    %c0_41 = arith.constant 0 : index
    %163 = vector.load %arg9[%162, %c0_41] : memref<8x32xf32, #tpu.memory_space<vmem>>, vector<1x32xf32>
    tpu.vector_store %arg9[%162, %c0_41], %161 {strides = array<i32>} : memref<8x32xf32, #tpu.memory_space<vmem>>, vector<1x32xf32>,
    %c7_i32 = arith.constant 7 : i32
    %164 = arith.index_cast %c7_i32 : i32 to index
    %c0_42 = arith.constant 0 : index
    %165 = vector.load %arg8[%164, %c0_42] : memref<8x128xf32, #tpu.memory_space<vmem>>, vector<1x128xf32>
    %cst_43 = arith.constant dense<0.000000e+00> : vector<1x128xf32>
    %166 = tpu.matmul %161, %14, %cst_43 {dimension_numbers = #tpu.dot_dimension_numbers<[1], [0], [0], [1], [0, 0, 1, 1], [], []>} : vector<1x32xf32>, vector<32x128xf32>, vector<1x128xf32> -> vector<1x128xf32>
    %167 = arith.addf %165, %166 : vector<1x128xf32>
    %168 = arith.negf %167 : vector<1x128xf32>
    %169 = math.exp %168 : vector<1x128xf32>
    %cst_44 = arith.constant 1.000000e+00 : f32
    %170 = vector.broadcast %cst_44 : f32 to vector<1x128xf32>
    %171 = arith.addf %170, %169 : vector<1x128xf32>
    %172 = arith.divf %170, %171 : vector<1x128xf32>
    %173 = math.tanh %167 : vector<1x128xf32>
    %174 = vector.extract_strided_slice %172 {offsets = [0, 0], sizes = [1, 32], strides = [1, 1]} : vector<1x128xf32> to vector<1x32xf32>
    %175 = vector.extract_strided_slice %172 {offsets = [0, 32], sizes = [1, 32], strides = [1, 1]} : vector<1x128xf32> to vector<1x32xf32>
    %176 = vector.extract_strided_slice %173 {offsets = [0, 64], sizes = [1, 32], strides = [1, 1]} : vector<1x128xf32> to vector<1x32xf32>
    %177 = vector.extract_strided_slice %172 {offsets = [0, 96], sizes = [1, 32], strides = [1, 1]} : vector<1x128xf32> to vector<1x32xf32>
    %178 = arith.mulf %175, %159 : vector<1x32xf32>
    %179 = arith.mulf %174, %176 : vector<1x32xf32>
    %180 = arith.addf %178, %179 : vector<1x32xf32>
    %181 = math.tanh %180 : vector<1x32xf32>
    %182 = arith.mulf %177, %181 : vector<1x32xf32>
    %183 = arith.index_cast %c7_i32 : i32 to index
    %c0_45 = arith.constant 0 : index
    %184 = vector.load %arg9[%183, %c0_45] : memref<8x32xf32, #tpu.memory_space<vmem>>, vector<1x32xf32>
    tpu.vector_store %arg9[%183, %c0_45], %182 {strides = array<i32>} : memref<8x32xf32, #tpu.memory_space<vmem>>, vector<1x32xf32>,
    %c8_i32 = arith.constant 8 : i32
    %c0_46 = arith.constant 0 : index
    %c0_47 = arith.constant 0 : index
    %185 = vector.load %arg9[%c0_46, %c0_47] : memref<8x32xf32, #tpu.memory_space<vmem>>, vector<8x32xf32>
    %c0_48 = arith.constant 0 : index
    %c0_49 = arith.constant 0 : index
    %186 = vector.load %arg5[%c0_48, %c0_49] : memref<32x8xf32, #tpu.memory_space<vmem>>, vector<32x8xf32>
    %cst_50 = arith.constant dense<0.000000e+00> : vector<8x8xf32>
    %187 = tpu.matmul %185, %186, %cst_50 {dimension_numbers = #tpu.dot_dimension_numbers<[1], [0], [0], [1], [0, 0, 1, 1], [], []>} : vector<8x32xf32>, vector<32x8xf32>, vector<8x8xf32> -> vector<8x8xf32>
    %c0_51 = arith.constant 0 : index
    %c0_52 = arith.constant 0 : index
    %188 = vector.load %arg6[%c0_51, %c0_52] : memref<1x8xf32, #tpu.memory_space<vmem>>, vector<1x8xf32>
    %189 = vector.broadcast %188 : vector<1x8xf32> to vector<8x8xf32>
    %190 = arith.addf %187, %189 : vector<8x8xf32>
    %cst_53 = arith.constant dense<0xFF800000> : vector<8xf32>
    %191 = vector.multi_reduction <maximumf>, %190, %cst_53 [1] : vector<8x8xf32> to vector<8xf32>
    %192 = vector.shape_cast %191 : vector<8xf32> to vector<8x1xf32>
    %193 = vector.broadcast %192 : vector<8x1xf32> to vector<8x8xf32>
    %194 = arith.subf %190, %193 : vector<8x8xf32>
    %195 = math.exp %194 : vector<8x8xf32>
    %cst_54 = arith.constant dense<0.000000e+00> : vector<8xf32>
    %196 = vector.multi_reduction <add>, %195, %cst_54 [1] : vector<8x8xf32> to vector<8xf32>
    %197 = vector.shape_cast %196 : vector<8xf32> to vector<8x1xf32>
    %198 = math.log %197 : vector<8x1xf32>
    %199 = arith.addf %192, %198 : vector<8x1xf32>
    %200 = vector.broadcast %199 : vector<8x1xf32> to vector<8x8xf32>
    %201 = arith.subf %190, %200 : vector<8x8xf32>
    %c0_55 = arith.constant 0 : index
    %c0_56 = arith.constant 0 : index
    %202 = vector.load %arg7[%c0_55, %c0_56] : memref<8x8xf32, #tpu.memory_space<vmem>>, vector<8x8xf32>
    tpu.vector_store %arg7[%c0_55, %c0_56], %201 {strides = array<i32>} : memref<8x8xf32, #tpu.memory_space<vmem>>, vector<8x8xf32>,
    return
  }
}

</mosaic_0001>

<bundles_post_ra>
// kernel: tpu_custom_call.1
= control target key start
LH: loop header
LB: loop body
LE: loop exit
PB: predicated region body
PF: predicated region fallthrough
CT: control target
= control target key end

     0   :  { %12 = vsyncpa [#allocation5], 0  ;;  %s1764_s0 = inlined_call_operand.vmem [shape: s32[8,1], index: 0, kind: input, shape index: {}]   ;;  %s1765_s1 = inlined_call_operand.vmem [shape: f32[16,32], index: 1, kind: input, shape index: {}]   ;;  %s1766_s2 = inlined_call_operand.vmem [shape: f32[32,128], index: 2, kind: input, shape index: {}]   ;;  %s1767_s3 = inlined_call_operand.hbm [shape: f32[32,128], index: 3, kind: input, shape index: {}]   ;;  %s1768_s4 = inlined_call_operand.hbm [shape: f32[1,128], index: 4, kind: input, shape index: {}]   ;;  %s1769_s5 = inlined_call_operand.vmem [shape: f32[32,8], index: 5, kind: input, shape index: {}]   ;;  %s1770_s6 = inlined_call_operand.vmem [shape: f32[1,8], index: 6, kind: input, shape index: {}]   ;;  %s1771_s7 = inlined_call_operand.hbm [shape: f32[8,8], index: 7, kind: output, shape index: {}]  }
   0x1   :  { %13 = vsyncpa [#allocation8], 0 }
   0x2   :  { %14 = vsyncpa [#allocation6], 0  ;;  %s1516_s24 = smov [#allocation4]  }
   0x3   :  { %s26_s25 = sshll.u32 %s1516_s24, 4  ;;  %s27_s25 = int_to_ptr.vmem [resolvable:$true] %s26_s25 }
   0x4   :  { %s1458_s26 = scalar_lea.vmem %s27_s25, 512  ;;  %p1463_p1 = scmp.lt.s32.totalorder %s27_s25, %s27_s25 }
   0x5   :  { %p1459_p0 = scmp.ne.s32.totalorder %s27_s25, %s1458_s26  ;;  %p1464_p2 = scmp.lt.s32.totalorder %s1458_s26, %s1458_s26 }
   0x7   :  { %p1465_p3 = por %p1464_p2, %p1463_p1 }
   0x9   :  { %p1466_p4 = pnand %p1465_p3, %p1459_p0 }
   0xb   :  { %1469 = shalt.err (!%p1466_p4)
}
   0xc   :  { %s1517_s27 = smov 128   ;;  %s1518_s28 = smov 8  }
   0xd   :  { %32 = dma.hbm_to_vmem [thread:$0]  %s1767_s3, 512, %s27_s25, [#allocation5], %s1517_s27, %s1517_s27, %s1518_s28  }
   0xe   :  { %s1519_s8 = smov [#allocation7]  }
   0xf   :  { %s39_s9 = sshll.u32 %s1519_s8, 4  ;;  %s40_s9 = int_to_ptr.vmem [resolvable:$true] %s39_s9 }
  0x10   :  { %s1478_s10 = scalar_lea.vmem %s40_s9, 16  ;;  %s1482_s11 = scalar_lea.vmem %s40_s9, 32 }
  0x11   :  { %p1479_p5 = scmp.ne.s32.totalorder %s40_s9, %s1478_s10  ;;  %p1483_p6 = scmp.lt.s32.totalorder %s40_s9, %s40_s9 }
  0x12   :  { %p1484_p7 = scmp.lt.s32.totalorder %s1482_s11, %s1478_s10 }
  0x14   :  { %p1485_p8 = por %p1484_p7, %p1483_p6 }
  0x16   :  { %p1486_p9 = pnand %p1485_p8, %p1479_p5 }
  0x18   :  { %1489 = shalt.err (!%p1486_p9)
}
  0x19   :  { %42 = dma.hbm_to_vmem [thread:$0]  %s1768_s4, 16, %s40_s9, [#allocation8]  }
  0x1a   :  { %1510 = dma.done.wait [#allocation5], 512  }
  0x1b   :  { %1511 = vsyncadd [#allocation5], 4294966784 }
  0x1c   :  { %1512 = dma.done.wait [#allocation8], 16  }
  0x1d   :  { %1513 = vsyncadd [#allocation8], 4294967280  ;;  %v1520_v0 = vmov 0   ;;  %vm75_vm0 = vcmask 261120   ;;  %v67_v1 = vld [vmem:[%s1766_s2 + $0x18] sm:$0xff]  ;;  %v66_v2 = vld [vmem:[%s1766_s2 + $0x10] sm:$0xff]  ;;  %v54_v13 = vlaneseq }
  0x1e   :  { %1381 = vset.pattern.permute.xlu0 %v1520_v0  ;;  %1254 = vmatprep.subr.mxu0 %v67_v1  ;;  %v62_v3 = vld [vmem:[%s1765_s1] sm:$0xff]  ;;  %v65_v4 = vld [vmem:[%s1766_s2 + $0x8] sm:$0xff]  ;;  %v1521_v8 = vmov 0.0   ;;  %vm1522_vm1 = vmmov 0   ;;  %v1608_v11 = vld [vmem:[#allocation4 + $0x8] sm:$0xff]  ;;  %vm157_vm3 = vcmask 130048  }
  0x1f   :  { %1255 = vmatpush3.msra.mxu0 %v67_v1  ;;  %1262 = vmatprep.mubr.msk.f32.mxu0 %vm75_vm0, %v62_v3  ;;  %v53_v5 = vld [vmem:[%s1764_s0] sm:$0xff]  ;;  %v63_v7 = vld [vmem:[%s1765_s1 + $0x8] sm:$0xff]  ;;  %v1612_v12 = vld [vmem:[#allocation4] sm:$0xff]  ;;  %v55_v14 = vand.u32 127, %v54_v13  ;;  %s1523_s0 = smov 64   ;;  %s1524_s1 = smov 32  }
  0x20   :  { %1256 = vmatprep.subr.mxu0 %v66_v2  ;;  %57 = vperm.xlu0 %1381, %v53_v5   ;;  %v64_v6 = vld [vmem:[%s1766_s2] sm:$0xff]  ;;  %v1601_v9 = vld [vmem:[#allocation4 + $0x18] sm:$0xff]  ;;  %v1179_v16 = vld [vmem:[#allocation7] ss:$0 sm:$0xff]  ;;  %vm339_vm4 = vcmask 253952   ;;  %vm1147_vm5 = vcmask 64512  }
  0x21   :  { %1257 = vmatpush3.msra.mxu0 %v66_v2  ;;  %1265 = vmatprep.subr.mxu1 %v1521_v8  ;;  %v1604_v10 = vld [vmem:[#allocation4 + $0x10] sm:$0xff] }
  0x22   :  { %1258 = vmatprep.subr.mxu0 %v65_v4  ;;  %1269 = vmatprep.mubr.msk.f32.mxu1 %vm1522_vm1, %v1521_v8 }
  0x23   :  { %1259 = vmatpush3.msra.mxu0 %v65_v4 }
  0x24   :  { %1260 = vmatprep.subr.mxu0 %v64_v6 }
  0x25   :  { %1261 = vmatpush3.msra.mxu0 %v64_v6 }
  0x26   :  { %1263 = vmatmul.mubr.msk.f32.vlgmr.msra.gmra.mxu0 %vm75_vm0, %v63_v7  ;;  %1283 = vmatprep.subr.mxu0 %v1521_v8 }
  0x27   :  { %1291 = vmatprep.mubr.msk.f32.mxu0 %vm1522_vm1, %v1521_v8  ;;  %1284 = vmatpush3.msra.mxu0 %v1601_v9 }
  0x28   :  { %1285 = vmatprep.subr.mxu0 %v1521_v8 }
  0x29   :  { %1286 = vmatpush3.msra.mxu0 %v1604_v10 }
  0x2a   :  { %1287 = vmatprep.subr.mxu0 %v1521_v8 }
  0x2b   :  { %1288 = vmatpush3.msra.mxu0 %v1608_v11 }
  0x2c   :  { %1289 = vmatprep.subr.mxu0 %v1521_v8 }
  0x2d   :  { %1290 = vmatpush3.msra.mxu0 %v1612_v12 }
  0x2e   :  { %1305 = vmatprep.subr.mxu0 %v1521_v8 }
  0x9b   :  { %v58_v15 = vpop.permute.xlu0 %57 }
  0x9c   :  { %vm59_vm2 = vcmp.eq.s32.totalorder %v55_v14, %v58_v15 }
  0x9d   :  { %v1178_v21 = vsel %vm59_vm2, 1.0, %v1521_v8 }
  0xe6   :  { %v1264_v17 = vpop.f32.mrf.mxu0 }
  0xe7   :  { %v154_v18 = vadd.f32 %v1264_v17, %v1179_v16 }
  0xe8   :  { %v148_v19 = vpop.f32.mrf.mxu0 }
  0xe9   :  { %v149_v20 = vadd.f32 %v1179_v16, %v148_v19  ;;  %1266 = vmatpush3.msra.mxu1 %v154_v18 }
  0xea   :  { %1267 = vmatprep.subr.mxu1 %v1521_v8 }
  0xeb   :  { %1268 = vmatpush3.msra.mxu1 %v149_v20 }
  0xec   :  { %1270 = vmatmul.mubr.msk.f32.vlgmr.msra.gmra.mxu1 %vm157_vm3, %v1178_v21  ;;  %1272 = vmatprep.subr.mxu1 %v1521_v8 }
  0xed   :  { %1273 = vmatpush3.msra.mxu1 %v1601_v9  ;;  %1280 = vmatprep.mubr.msk.f32.mxu1 %vm1522_vm1, %v1521_v8 }
  0xee   :  { %1274 = vmatprep.subr.mxu1 %v1521_v8 }
  0xef   :  { %1275 = vmatpush3.msra.mxu1 %v1604_v10 }
  0xf0   :  { %1276 = vmatprep.subr.mxu1 %v1521_v8 }
  0xf1   :  { %1277 = vmatpush3.msra.mxu1 %v1608_v11 }
  0xf2   :  { %1278 = vmatprep.subr.mxu1 %v1521_v8 }
  0xf3   :  { %1279 = vmatpush3.msra.mxu1 %v1612_v12 }
  0xf4   :  { %1281 = vmatmul.mubr.f32.vlgmr.msra.gmra.mxu1 %v1521_v8  ;;  %1294 = vmatprep.subr.mxu1 %v1521_v8 }
  0xf5   :  { %1295 = vmatpush3.msra.mxu1 %v1601_v9  ;;  %1302 = vmatprep.mubr.msk.f32.mxu1 %vm1522_vm1, %v1521_v8 }
  0xf6   :  { %1296 = vmatprep.subr.mxu1 %v1521_v8 }
  0xf7   :  { %1297 = vmatpush3.msra.mxu1 %v1604_v10 }
  0xf8   :  { %1298 = vmatprep.subr.mxu1 %v1521_v8 }
  0xf9   :  { %1299 = vmatpush3.msra.mxu1 %v1608_v11 }
  0xfa   :  { %1300 = vmatprep.subr.mxu1 %v1521_v8 }
  0xfb   :  { %1301 = vmatpush3.msra.mxu1 %v1612_v12 }
  0xfc   :  { %1316 = vmatprep.subr.mxu1 %v1521_v8 }
 0x1ac   :  { %v227_v22 = vpop.f32.mrf.mxu1 }
 0x1ad   :  { %231 = vst [vmem:[#allocation2] sm:$0xff] %v227_v22 }
 0x1ae   :  { %v1271_v23 = vpop.f32.mrf.mxu1 }
 0x1b4   :  { %v236_v24 = vld [vmem:[#allocation2] sm:$0x1]  ;;  %v306_v25 = vpop.f32.mrf.mxu1  ;;  %v341_v42 = vld [vmem:[#allocation2 + $0x1] sm:$0x1]  ;;  %v444_v60 = vld [vmem:[#allocation2 + $0x2] sm:$0x1] }
 0x1b5   :  { %v310_v26 = vadd.f32 %v306_v25, %v236_v24  ;;  %v547_v19 = vld [vmem:[#allocation2 + $0x3] sm:$0x1] }
 0x1b6   :  { %v1282_v27 = vpop.f32.mrf.mxu1 }
 0x1b7   :  { %1382 = vtanh.f32 %v310_v26  ;;  %v1183_v29 = vmul.f32 -1.442695, %v310_v26 }
 0x1b9   :  { %1384 = vpow2.f32 %v1183_v29 }
 0x1c4   :  { %v1383_v28 = vpop.eup %1382 }
 0x1c5   :  { %320 = vrot.lane.b32.xlu0 %v1383_v28, %s1523_s0 }
 0x1c6   :  { %v1385_v30 = vpop.eup %1384 }
 0x1c7   :  { %v314_v31 = vadd.f32 1.0, %v1385_v30 }
 0x1c9   :  { %1386 = vrcp.f32 %v314_v31 }
 0x1d6   :  { %v1387_v32 = vpop.eup %1386 }
 0x1d7   :  { %v318_v35 = vmul.f32 0.0, %v1387_v32 }
 0x237   :  { %v321_v33 = vpop.permute.xlu0 %320 }
 0x238   :  { %v323_v34 = vmul.f32 %v1387_v32, %v321_v33 }
 0x23a   :  { %325 = vrot.lane.b32.xlu1 %v323_v34, %s1524_s1 }
 0x2ac   :  { %v326_v36 = vpop.permute.xlu1 %325 }
 0x2ad   :  { %v328_v37 = vadd.f32 %v326_v36, %v318_v35 }
 0x2af   :  { %1388 = vtanh.f32 %v328_v37 }
 0x2bc   :  { %v1389_v38 = vpop.eup %1388 }
 0x2bd   :  { %331 = vrot.lane.b32.xlu1 %v1389_v38, %s1523_s0 }
 0x32f   :  { %v332_v39 = vpop.permute.xlu1 %331 }
 0x330   :  { %v334_v40 = vmul.f32 %v1387_v32, %v332_v39 }
 0x332   :  { %336 = vrot.lane.b32.xlu0 %v334_v40, %s1524_s1 }
 0x3a4   :  { %v337_v41 = vpop.permute.xlu0 %336 }
 0x3a5   :  { %340 = vst.msk [vmem:[#allocation3] sm:$0x1] %vm339_vm4, %v337_v41  ;;  %1292 = vmatmul.mubr.msk.f32.vlgmr.msra.gmra.mxu0 %vm75_vm0, %v337_v41 }
 0x3a6   :  { %1306 = vmatpush3.msra.mxu0 %v1601_v9  ;;  %1313 = vmatprep.mubr.msk.f32.mxu0 %vm1522_vm1, %v1521_v8 }
 0x3a7   :  { %1307 = vmatprep.subr.mxu0 %v1521_v8 }
 0x3a8   :  { %1308 = vmatpush3.msra.mxu0 %v1604_v10 }
 0x3a9   :  { %1309 = vmatprep.subr.mxu0 %v1521_v8 }
 0x3aa   :  { %1310 = vmatpush3.msra.mxu0 %v1608_v11 }
 0x3ab   :  { %1311 = vmatprep.subr.mxu0 %v1521_v8 }
 0x3ac   :  { %1312 = vmatpush3.msra.mxu0 %v1612_v12 }
 0x3ad   :  { %1327 = vmatprep.subr.mxu0 %v1521_v8 }
 0x465   :  { %v410_v43 = vpop.f32.mrf.mxu0 }
 0x466   :  { %v414_v44 = vadd.f32 %v410_v43, %v341_v42 }
 0x467   :  { %v1293_v45 = vpop.f32.mrf.mxu0 }
 0x468   :  { %1390 = vtanh.f32 %v414_v44  ;;  %v1185_v47 = vmul.f32 -1.442695, %v414_v44 }
 0x46a   :  { %1392 = vpow2.f32 %v1185_v47 }
 0x475   :  { %v1391_v46 = vpop.eup %1390 }
 0x476   :  { %424 = vrot.lane.b32.xlu1 %v1391_v46, %s1523_s0 }
 0x477   :  { %v1393_v48 = vpop.eup %1392 }
 0x478   :  { %v418_v49 = vadd.f32 1.0, %v1393_v48 }
 0x47a   :  { %1394 = vrcp.f32 %v418_v49 }
 0x487   :  { %v1395_v50 = vpop.eup %1394 }
 0x488   :  { %v422_v53 = vmul.f32 %v1395_v50, %v328_v37  ;;  %v650_v37 = vld [vmem:[#allocation2 + $0x4] sm:$0x1] }
 0x4e8   :  { %v425_v51 = vpop.permute.xlu1 %424 }
 0x4e9   :  { %v427_v52 = vmul.f32 %v1395_v50, %v425_v51 }
 0x4eb   :  { %429 = vrot.lane.b32.xlu0 %v427_v52, %s1524_s1 }
 0x55d   :  { %v430_v54 = vpop.permute.xlu0 %429 }
 0x55e   :  { %v432_v55 = vadd.f32 %v430_v54, %v422_v53 }
 0x560   :  { %1396 = vtanh.f32 %v432_v55 }
 0x56d   :  { %v1397_v56 = vpop.eup %1396 }
 0x56e   :  { %435 = vrot.lane.b32.xlu1 %v1397_v56, %s1523_s0 }
 0x5e0   :  { %v436_v57 = vpop.permute.xlu1 %435 }
 0x5e1   :  { %v438_v58 = vmul.f32 %v1395_v50, %v436_v57 }
 0x5e3   :  { %440 = vrot.lane.b32.xlu0 %v438_v58, %s1524_s1 }
 0x655   :  { %v441_v59 = vpop.permute.xlu0 %440 }
 0x656   :  { %443 = vst.msk [vmem:[#allocation3 + $0x1] sm:$0x1] %vm339_vm4, %v441_v59  ;;  %1303 = vmatmul.mubr.msk.f32.vlgmr.msra.gmra.mxu1 %vm75_vm0, %v441_v59 }
 0x657   :  { %1317 = vmatpush3.msra.mxu1 %v1601_v9  ;;  %1324 = vmatprep.mubr.msk.f32.mxu1 %vm1522_vm1, %v1521_v8 }
 0x658   :  { %1318 = vmatprep.subr.mxu1 %v1521_v8 }
 0x659   :  { %1319 = vmatpush3.msra.mxu1 %v1604_v10 }
 0x65a   :  { %1320 = vmatprep.subr.mxu1 %v1521_v8 }
 0x65b   :  { %1321 = vmatpush3.msra.mxu1 %v1608_v11 }
 0x65c   :  { %1322 = vmatprep.subr.mxu1 %v1521_v8 }
 0x65d   :  { %1323 = vmatpush3.msra.mxu1 %v1612_v12 }
 0x65e   :  { %1338 = vmatprep.subr.mxu1 %v1521_v8 }
 0x716   :  { %v513_v61 = vpop.f32.mrf.mxu1 }
 0x717   :  { %v517_v62 = vadd.f32 %v513_v61, %v444_v60 }
 0x718   :  { %v1304_v63 = vpop.f32.mrf.mxu1 }
 0x719   :  { %1398 = vtanh.f32 %v517_v62  ;;  %v1187_v1 = vmul.f32 -1.442695, %v517_v62 }
 0x71b   :  { %1400 = vpow2.f32 %v1187_v1 }
 0x726   :  { %v1399_v0 = vpop.eup %1398 }
 0x727   :  { %527 = vrot.lane.b32.xlu1 %v1399_v0, %s1523_s0 }
 0x728   :  { %v1401_v2 = vpop.eup %1400 }
 0x729   :  { %v521_v3 = vadd.f32 1.0, %v1401_v2 }
 0x72b   :  { %1402 = vrcp.f32 %v521_v3 }
 0x738   :  { %v1403_v4 = vpop.eup %1402 }
 0x739   :  { %v525_v7 = vmul.f32 %v1403_v4, %v432_v55  ;;  %v753_v55 = vld [vmem:[#allocation2 + $0x5] sm:$0x1] }
 0x799   :  { %v528_v5 = vpop.permute.xlu1 %527 }
 0x79a   :  { %v530_v6 = vmul.f32 %v1403_v4, %v528_v5  ;;  %v856_v5 = vld [vmem:[#allocation2 + $0x6] sm:$0x1] }
 0x79c   :  { %532 = vrot.lane.b32.xlu0 %v530_v6, %s1524_s1 }
 0x80e   :  { %v533_v13 = vpop.permute.xlu0 %532 }
 0x80f   :  { %v535_v14 = vadd.f32 %v533_v13, %v525_v7 }
 0x811   :  { %1404 = vtanh.f32 %v535_v14 }
 0x81e   :  { %v1405_v15 = vpop.eup %1404 }
 0x81f   :  { %538 = vrot.lane.b32.xlu1 %v1405_v15, %s1523_s0 }
 0x891   :  { %v539_v16 = vpop.permute.xlu1 %538 }
 0x892   :  { %v541_v17 = vmul.f32 %v1403_v4, %v539_v16 }
 0x894   :  { %543 = vrot.lane.b32.xlu0 %v541_v17, %s1524_s1 }
 0x906   :  { %v544_v18 = vpop.permute.xlu0 %543 }
 0x907   :  { %546 = vst.msk [vmem:[#allocation3 + $0x2] sm:$0x1] %vm339_vm4, %v544_v18  ;;  %1314 = vmatmul.mubr.msk.f32.vlgmr.msra.gmra.mxu0 %vm75_vm0, %v544_v18 }
 0x908   :  { %1328 = vmatpush3.msra.mxu0 %v1601_v9  ;;  %1335 = vmatprep.mubr.msk.f32.mxu0 %vm1522_vm1, %v1521_v8 }
 0x909   :  { %1329 = vmatprep.subr.mxu0 %v1521_v8 }
 0x90a   :  { %1330 = vmatpush3.msra.mxu0 %v1604_v10 }
 0x90b   :  { %1331 = vmatprep.subr.mxu0 %v1521_v8 }
 0x90c   :  { %1332 = vmatpush3.msra.mxu0 %v1608_v11 }
 0x90d   :  { %1333 = vmatprep.subr.mxu0 %v1521_v8 }
 0x90e   :  { %1334 = vmatpush3.msra.mxu0 %v1612_v12 }
 0x90f   :  { %1349 = vmatprep.subr.mxu0 %v1521_v8 }
 0x9c7   :  { %v616_v20 = vpop.f32.mrf.mxu0 }
 0x9c8   :  { %v620_v21 = vadd.f32 %v616_v20, %v547_v19 }
 0x9c9   :  { %v1315_v22 = vpop.f32.mrf.mxu0 }
 0x9ca   :  { %1406 = vtanh.f32 %v620_v21  ;;  %v1189_v24 = vmul.f32 -1.442695, %v620_v21 }
 0x9cc   :  { %1408 = vpow2.f32 %v1189_v24 }
 0x9d7   :  { %v1407_v23 = vpop.eup %1406 }
 0x9d8   :  { %630 = vrot.lane.b32.xlu1 %v1407_v23, %s1523_s0 }
 0x9d9   :  { %v1409_v25 = vpop.eup %1408 }
 0x9da   :  { %v624_v26 = vadd.f32 1.0, %v1409_v25 }
 0x9dc   :  { %1410 = vrcp.f32 %v624_v26 }
 0x9e9   :  { %v1411_v27 = vpop.eup %1410 }
 0x9ea   :  { %v628_v30 = vmul.f32 %v1411_v27, %v535_v14 }
 0xa4a   :  { %v631_v28 = vpop.permute.xlu1 %630 }
 0xa4b   :  { %v633_v29 = vmul.f32 %v1411_v27, %v631_v28  ;;  %v959_v28 = vld [vmem:[#allocation2 + $0x7] sm:$0x1] }
 0xa4d   :  { %635 = vrot.lane.b32.xlu0 %v633_v29, %s1524_s1 }
 0xabf   :  { %v636_v31 = vpop.permute.xlu0 %635 }
 0xac0   :  { %v638_v32 = vadd.f32 %v636_v31, %v628_v30 }
 0xac2   :  { %1412 = vtanh.f32 %v638_v32 }
 0xacf   :  { %v1413_v33 = vpop.eup %1412 }
 0xad0   :  { %641 = vrot.lane.b32.xlu1 %v1413_v33, %s1523_s0 }
 0xb42   :  { %v642_v34 = vpop.permute.xlu1 %641 }
 0xb43   :  { %v644_v35 = vmul.f32 %v1411_v27, %v642_v34 }
 0xb45   :  { %646 = vrot.lane.b32.xlu0 %v644_v35, %s1524_s1 }
 0xbb7   :  { %v647_v36 = vpop.permute.xlu0 %646 }
 0xbb8   :  { %649 = vst.msk [vmem:[#allocation3 + $0x3] sm:$0x1] %vm339_vm4, %v647_v36  ;;  %1325 = vmatmul.mubr.msk.f32.vlgmr.msra.gmra.mxu1 %vm75_vm0, %v647_v36 }
 0xbb9   :  { %1339 = vmatpush3.msra.mxu1 %v1601_v9  ;;  %1346 = vmatprep.mubr.msk.f32.mxu1 %vm1522_vm1, %v1521_v8 }
 0xbba   :  { %1340 = vmatprep.subr.mxu1 %v1521_v8 }
 0xbbb   :  { %1341 = vmatpush3.msra.mxu1 %v1604_v10 }
 0xbbc   :  { %1342 = vmatprep.subr.mxu1 %v1521_v8 }
 0xbbd   :  { %1343 = vmatpush3.msra.mxu1 %v1608_v11 }
 0xbbe   :  { %1344 = vmatprep.subr.mxu1 %v1521_v8 }
 0xbbf   :  { %1345 = vmatpush3.msra.mxu1 %v1612_v12 }
 0xbc0   :  { %1360 = vmatprep.subr.mxu1 %v1521_v8 }
 0xc78   :  { %v719_v38 = vpop.f32.mrf.mxu1 }
 0xc79   :  { %v723_v39 = vadd.f32 %v719_v38, %v650_v37 }
 0xc7a   :  { %v1326_v40 = vpop.f32.mrf.mxu1 }
 0xc7b   :  { %1414 = vtanh.f32 %v723_v39  ;;  %v1191_v42 = vmul.f32 -1.442695, %v723_v39 }
 0xc7d   :  { %1416 = vpow2.f32 %v1191_v42 }
 0xc88   :  { %v1415_v41 = vpop.eup %1414 }
 0xc89   :  { %733 = vrot.lane.b32.xlu1 %v1415_v41, %s1523_s0 }
 0xc8a   :  { %v1417_v43 = vpop.eup %1416 }
 0xc8b   :  { %v727_v44 = vadd.f32 1.0, %v1417_v43  ;;  %v1066_v43 = vld [vmem:[%s1769_s5 + $0x18] sm:$0xff] }
 0xc8d   :  { %1418 = vrcp.f32 %v727_v44  ;;  %v1065_v44 = vld [vmem:[%s1769_s5 + $0x10] sm:$0xff] }
 0xc9a   :  { %v1419_v45 = vpop.eup %1418 }
 0xc9b   :  { %v731_v48 = vmul.f32 %v1419_v45, %v638_v32 }
 0xcfb   :  { %v734_v46 = vpop.permute.xlu1 %733 }
 0xcfc   :  { %v736_v47 = vmul.f32 %v1419_v45, %v734_v46  ;;  %v1063_v46 = vld [vmem:[%s1769_s5] sm:$0xff] }
 0xcfe   :  { %738 = vrot.lane.b32.xlu0 %v736_v47, %s1524_s1 }
 0xd70   :  { %v739_v49 = vpop.permute.xlu0 %738 }
 0xd71   :  { %v741_v50 = vadd.f32 %v739_v49, %v731_v48 }
 0xd73   :  { %1420 = vtanh.f32 %v741_v50 }
 0xd80   :  { %v1421_v51 = vpop.eup %1420 }
 0xd81   :  { %744 = vrot.lane.b32.xlu1 %v1421_v51, %s1523_s0  ;;  %v1198_v51 = vld [vmem:[%s1770_s6] ss:$0 sm:$0xff] }
 0xdf3   :  { %v745_v52 = vpop.permute.xlu1 %744 }
 0xdf4   :  { %v747_v53 = vmul.f32 %v1419_v45, %v745_v52  ;;  %v1064_v45 = vld [vmem:[%s1769_s5 + $0x8] sm:$0xff]  ;;  %s1525_s5 = smov [#allocation9]  }
 0xdf5   :  { %s1168_s6 = sshll.u32 %s1525_s5, 4  ;;  %s1169_s6 = int_to_ptr.vmem [resolvable:$true] %s1168_s6 }
 0xdf6   :  { %749 = vrot.lane.b32.xlu0 %v747_v53, %s1524_s1  ;;  %s1490_s12 = scalar_lea.vmem %s1169_s6, 128  ;;  %p1495_p11 = scmp.lt.s32.totalorder %s1169_s6, %s1169_s6 }
 0xdf7   :  { %p1491_p10 = scmp.ne.s32.totalorder %s1169_s6, %s1490_s12  ;;  %p1496_p12 = scmp.lt.s32.totalorder %s1490_s12, %s1490_s12 }
 0xdf9   :  { %p1497_p13 = por %p1496_p12, %p1495_p11 }
 0xdfb   :  { %p1498_p0 = pnand %p1497_p13, %p1491_p10 }
 0xe68   :  { %v750_v54 = vpop.permute.xlu0 %749 }
 0xe69   :  { %752 = vst.msk [vmem:[#allocation3 + $0x4] sm:$0x1] %vm339_vm4, %v750_v54  ;;  %1336 = vmatmul.mubr.msk.f32.vlgmr.msra.gmra.mxu0 %vm75_vm0, %v750_v54 }
 0xe6a   :  { %1350 = vmatpush3.msra.mxu0 %v1601_v9  ;;  %1357 = vmatprep.mubr.msk.f32.mxu0 %vm1522_vm1, %v1521_v8 }
 0xe6b   :  { %1351 = vmatprep.subr.mxu0 %v1521_v8 }
 0xe6c   :  { %1352 = vmatpush3.msra.mxu0 %v1604_v10 }
 0xe6d   :  { %1353 = vmatprep.subr.mxu0 %v1521_v8 }
 0xe6e   :  { %1354 = vmatpush3.msra.mxu0 %v1608_v11 }
 0xe6f   :  { %1355 = vmatprep.subr.mxu0 %v1521_v8 }
 0xe70   :  { %1356 = vmatpush3.msra.mxu0 %v1612_v12 }
 0xf29   :  { %v822_v56 = vpop.f32.mrf.mxu0 }
 0xf2a   :  { %v826_v57 = vadd.f32 %v822_v56, %v753_v55 }
 0xf2b   :  { %v1337_v58 = vpop.f32.mrf.mxu0 }
 0xf2c   :  { %1422 = vtanh.f32 %v826_v57  ;;  %v1193_v59 = vmul.f32 -1.442695, %v826_v57 }
 0xf2e   :  { %1424 = vpow2.f32 %v1193_v59 }
 0xf39   :  { %v1423_v9 = vpop.eup %1422 }
 0xf3a   :  { %836 = vrot.lane.b32.xlu1 %v1423_v9, %s1523_s0 }
 0xf3b   :  { %v1425_v60 = vpop.eup %1424 }
 0xf3c   :  { %v830_v10 = vadd.f32 1.0, %v1425_v60 }
 0xf3e   :  { %1426 = vrcp.f32 %v830_v10 }
 0xf4b   :  { %v1427_v61 = vpop.eup %1426 }
 0xf4c   :  { %v834_v63 = vmul.f32 %v1427_v61, %v741_v50 }
 0xfac   :  { %v837_v62 = vpop.permute.xlu1 %836 }
 0xfad   :  { %v839_v11 = vmul.f32 %v1427_v61, %v837_v62 }
 0xfaf   :  { %841 = vrot.lane.b32.xlu0 %v839_v11, %s1524_s1 }
0x1021   :  { %v842_v12 = vpop.permute.xlu0 %841 }
0x1022   :  { %v844_v0 = vadd.f32 %v842_v12, %v834_v63 }
0x1024   :  { %1428 = vtanh.f32 %v844_v0 }
0x1031   :  { %v1429_v1 = vpop.eup %1428 }
0x1032   :  { %847 = vrot.lane.b32.xlu1 %v1429_v1, %s1523_s0 }
0x10a4   :  { %v848_v2 = vpop.permute.xlu1 %847 }
0x10a5   :  { %v850_v3 = vmul.f32 %v1427_v61, %v848_v2 }
0x10a7   :  { %852 = vrot.lane.b32.xlu0 %v850_v3, %s1524_s1 }
0x1119   :  { %v853_v4 = vpop.permute.xlu0 %852 }
0x111a   :  { %855 = vst.msk [vmem:[#allocation3 + $0x5] sm:$0x1] %vm339_vm4, %v853_v4  ;;  %1347 = vmatmul.mubr.msk.f32.vlgmr.msra.gmra.mxu1 %vm75_vm0, %v853_v4 }
0x111b   :  { %1368 = vmatprep.mubr.msk.f32.mxu1 %vm1522_vm1, %v1521_v8  ;;  %1361 = vmatpush3.msra.mxu1 %v1066_v43 }
0x111c   :  { %1362 = vmatprep.subr.mxu1 %v1521_v8 }
0x111d   :  { %1363 = vmatpush3.msra.mxu1 %v1065_v44 }
0x111e   :  { %1364 = vmatprep.subr.mxu1 %v1521_v8 }
0x111f   :  { %1365 = vmatpush3.msra.mxu1 %v1064_v45 }
0x1120   :  { %1366 = vmatprep.subr.mxu1 %v1521_v8 }
0x1121   :  { %1367 = vmatpush3.msra.mxu1 %v1063_v46 }
0x11da   :  { %v925_v6 = vpop.f32.mrf.mxu1 }
0x11db   :  { %v929_v7 = vadd.f32 %v925_v6, %v856_v5 }
0x11dc   :  { %v1348_v13 = vpop.f32.mrf.mxu1 }
0x11dd   :  { %1430 = vtanh.f32 %v929_v7  ;;  %v1195_v15 = vmul.f32 -1.442695, %v929_v7 }
0x11df   :  { %1432 = vpow2.f32 %v1195_v15 }
0x11ea   :  { %v1431_v14 = vpop.eup %1430 }
0x11eb   :  { %939 = vrot.lane.b32.xlu1 %v1431_v14, %s1523_s0 }
0x11ec   :  { %v1433_v16 = vpop.eup %1432 }
0x11ed   :  { %v933_v17 = vadd.f32 1.0, %v1433_v16 }
0x11ef   :  { %1434 = vrcp.f32 %v933_v17 }
0x11fc   :  { %v1435_v18 = vpop.eup %1434 }
0x11fd   :  { %v937_v21 = vmul.f32 %v1435_v18, %v844_v0 }
0x125d   :  { %v940_v19 = vpop.permute.xlu1 %939 }
0x125e   :  { %v942_v20 = vmul.f32 %v1435_v18, %v940_v19 }
0x1260   :  { %944 = vrot.lane.b32.xlu0 %v942_v20, %s1524_s1 }
0x12d2   :  { %v945_v22 = vpop.permute.xlu0 %944 }
0x12d3   :  { %v947_v23 = vadd.f32 %v945_v22, %v937_v21 }
0x12d5   :  { %1436 = vtanh.f32 %v947_v23 }
0x12e2   :  { %v1437_v24 = vpop.eup %1436 }
0x12e3   :  { %950 = vrot.lane.b32.xlu1 %v1437_v24, %s1523_s0 }
0x1355   :  { %v951_v25 = vpop.permute.xlu1 %950 }
0x1356   :  { %v953_v26 = vmul.f32 %v1435_v18, %v951_v25 }
0x1358   :  { %955 = vrot.lane.b32.xlu0 %v953_v26, %s1524_s1 }
0x13ca   :  { %v956_v27 = vpop.permute.xlu0 %955 }
0x13cb   :  { %958 = vst.msk [vmem:[#allocation3 + $0x6] sm:$0x1] %vm339_vm4, %v956_v27  ;;  %1358 = vmatmul.mubr.msk.f32.vlgmr.msra.gmra.mxu0 %vm75_vm0, %v956_v27 }
0x148b   :  { %v1028_v29 = vpop.f32.mrf.mxu0 }
0x148c   :  { %v1032_v30 = vadd.f32 %v1028_v29, %v959_v28 }
0x148d   :  { %v1359_v31 = vpop.f32.mrf.mxu0 }
0x148e   :  { %1438 = vtanh.f32 %v1032_v30  ;;  %v1197_v33 = vmul.f32 -1.442695, %v1032_v30 }
0x1490   :  { %1440 = vpow2.f32 %v1197_v33 }
0x149b   :  { %v1439_v32 = vpop.eup %1438 }
0x149c   :  { %1042 = vrot.lane.b32.xlu1 %v1439_v32, %s1523_s0 }
0x149d   :  { %v1441_v34 = vpop.eup %1440 }
0x149e   :  { %v1036_v35 = vadd.f32 1.0, %v1441_v34 }
0x14a0   :  { %1442 = vrcp.f32 %v1036_v35 }
0x14ad   :  { %v1443_v36 = vpop.eup %1442 }
0x14ae   :  { %v1040_v39 = vmul.f32 %v1443_v36, %v947_v23 }
0x150e   :  { %v1043_v37 = vpop.permute.xlu1 %1042 }
0x150f   :  { %v1045_v38 = vmul.f32 %v1443_v36, %v1043_v37 }
0x1511   :  { %1047 = vrot.lane.b32.xlu0 %v1045_v38, %s1524_s1 }
0x1583   :  { %v1048_v40 = vpop.permute.xlu0 %1047 }
0x1584   :  { %v1050_v41 = vadd.f32 %v1048_v40, %v1040_v39 }
0x1586   :  { %1444 = vtanh.f32 %v1050_v41 }
0x1593   :  { %v1445_v42 = vpop.eup %1444 }
0x1594   :  { %1053 = vrot.lane.b32.xlu1 %v1445_v42, %s1523_s0 }
0x1606   :  { %v1054_v47 = vpop.permute.xlu1 %1053 }
0x1607   :  { %v1056_v48 = vmul.f32 %v1443_v36, %v1054_v47 }
0x1609   :  { %1058 = vrot.lane.b32.xlu0 %v1056_v48, %s1524_s1 }
0x167b   :  { %v1059_v49 = vpop.permute.xlu0 %1058 }
0x167c   :  { %1061 = vst.msk [vmem:[#allocation3 + $0x7] sm:$0x1] %vm339_vm4, %v1059_v49 }
0x1683   :  { %v1062_v50 = vld [vmem:[#allocation3] sm:$0xff] }
0x1684   :  { %1369 = vmatmul.mubr.msk.f32.vlgmr.msra.gmra.mxu1 %vm75_vm0, %v1062_v50 }
0x1744   :  { %v1143_v52 = vpop.f32.mrf.mxu1 }
0x1745   :  { %v1144_v53 = vadd.f32 %v1198_v51, %v1143_v52 }
0x1746   :  { %v1370_v54 = vpop.f32.mrf.mxu1 }
0x1747   :  { %v1148_v8 = vsel %vm1147_vm5, %v1144_v53, -inf }
0x1748   :  { %1149 = vmax.xlane.f32.xlu1 %v1148_v8 }
0x17d1   :  { %v1150_v55 = vpop.xlane.xlu1 %1149 }
0x17d2   :  { %v1151_v56 = vsub.f32 %v1144_v53, %v1150_v55 }
0x17d4   :  { %v1152_v57 = vmul.f32 1.442695, %v1151_v56 }
0x17d6   :  { %1446 = vpow2.f32 %v1152_v57 }
0x17e3   :  { %v1447_v58 = vpop.eup %1446 }
0x17e4   :  { %v1154_v9 = vsel %vm1147_vm5, %v1447_v58, 0.0 }
0x17e5   :  { %1155 = vadd.xlane.f32.xlu0 %v1154_v9 }
0x186e   :  { %v1156_v59 = vpop.xlane.xlu0 %1155 }
0x186f   :  { %1448 = vlog2.f32 %v1156_v59 }
0x187c   :  { %v1449_v60 = vpop.eup %1448 }
0x187d   :  { %v1158_v10 = vmul.f32 0.6931472, %v1449_v60 }
0x187f   :  { %v1159_v61 = vadd.f32 %v1158_v10, %v1150_v55 }
0x1881   :  { %v1160_v62 = vsub.f32 %v1144_v53, %v1159_v61 }
0x1883   :  { %1161 = vst.msk [vmem:[#allocation9] sm:$0xff] %vm1147_vm5, %v1160_v62 }
0x1884   :  { %1501 = shalt.err (!%p1498_p0)
}
0x1885   :  { %1171 = dma.vmem_to_hbm [thread:$0]  %s1169_s6, 128, %s1771_s7, [#allocation6]  }
0x1886   :  { %1514 = dma.done.wait [#allocation6], 128  }
0x1887   :  { %1515 = vsyncadd [#allocation6], 4294967168 }
0x1888   :  { %1175 = vsyncpa [#allocation5], 1 }
0x1889   :  { %1176 = vsyncpa [#allocation8], 1 }
0x188a   :  { %1177 = vsyncpa [#allocation6], 1 }

</bundles_post_ra>
